<compile_context>
chip_gen: v6e
topology: v6e:2x2x1
jax: 0.10.0
libtpu: 0.0.40
codegen_flags: <defaults>
</compile_context>

<pallas_src>
import functools

import jax
import jax.numpy as jnp
from jax.experimental import pallas as pl
from jax.experimental.pallas import tpu as pltpu

EPS = 1e-5


def _round_up(x, m):
    return ((x + m - 1) // m) * m


def _poincare_xent_kernel(pred_ref, emb2_ref, crow_ref, tgt_ref, out_ref,
                          s_ref, wt_ref, usq_ref, invu2_ref,
                          *, n_lane_chunks, padded_classes):
    c = pl.program_id(1)
    nc = pl.num_programs(1)

    # ---- per-B-tile init (first class tile): row stats + target distance ----
    @pl.when(c == 0)
    def _():
        u32 = pred_ref[...].astype(jnp.float32)                      # (TB, D)
        usq = jnp.sum(u32 * u32, axis=1, keepdims=True)              # (TB, 1)
        usq_ref[...] = usq
        invu2 = 2.0 * pl.reciprocal(1.0 - jnp.clip(usq, 0.0, 1.0 - EPS))
        invu2_ref[...] = invu2                                       # 2/(1-u2)
        s_ref[...] = jnp.zeros_like(s_ref)

        # Target-class distance from the explicit difference (numerically
        # robust near the ball boundary), once per B tile.
        vt = tgt_ref[...].astype(jnp.float32)                        # (TB, D)
        diff = u32 - vt
        sqd_t = jnp.sum(diff * diff, axis=1, keepdims=True)          # (TB, 1)
        vtsq = jnp.sum(vt * vt, axis=1, keepdims=True)
        invvt = pl.reciprocal(1.0 - jnp.clip(vtsq, 0.0, 1.0 - EPS))
        d_t = sqd_t * invu2 * invvt
        # exp(+dist) = x + sqrt(x^2 - 1) with x = 1 + d
        wt_ref[...] = (1.0 + d_t) + jnp.sqrt(d_t * (d_t + 2.0))

    # ---- O(TB*TC) hot loop ---------------------------------------------------
    # emb2 holds 2*all_embs, so the MXU directly yields 2*u.v.
    uv2 = jax.lax.dot_general(pred_ref[...], emb2_ref[...],
                              (((1,), (1,)), ((), ())),
                              preferred_element_type=jnp.float32)    # (TB, TC)

    vsq_row = crow_ref[0:1, :]     # ||v||^2              (1, TC)  (precomputed)
    invv_row = crow_ref[1:2, :]    # 1/(1 - clip(||v||^2)) (1, TC)  (precomputed)

    sqdist = jnp.maximum((usq_ref[...] + vsq_row) - uv2, 0.0)
    d = (sqdist * invu2_ref[...]) * invv_row
    w = (1.0 + d) + jnp.sqrt(d * (d + 2.0))              # exp(+dist)
    inv_w = pl.reciprocal(w, approx=True)                # exp(-dist), EUP vrcp

    # Lane-preserved partial sums (pure VPU adds); one XLU reduce at finalize.
    def _lane_partial(x):
        part = x[:, 0:128]
        for k in range(1, n_lane_chunks):
            part = part + x[:, k * 128:(k + 1) * 128]
        return part

    if padded_classes:
        last = nc - 1

        @pl.when(c != last)
        def _():
            s_ref[...] += _lane_partial(inv_w)

        @pl.when(c == last)
        def _():
            # Padding only lives in the last class tile; mask it out there.
            mask_row = crow_ref[2:3, :]                   # 1 real / 0 padded
            s_ref[...] += _lane_partial(inv_w * mask_row)
    else:
        s_ref[...] += _lane_partial(inv_w)

    # ---- finalize: loss_b = dist_t + log(sum_c exp(-dist_c)) -----------------
    @pl.when(c == nc - 1)
    def _():
        s = jnp.sum(s_ref[...], axis=1, keepdims=True)    # (TB, 1)
        out_ref[...] = jnp.log(wt_ref[...] * s)


def poincare_xentropy_loss(pred_embs, all_embs, target_idx, *, tb=256, tc=2048):
    """pred_embs: (B, D), all_embs: (C, D), target_idx: (B,) int."""
    B, D = pred_embs.shape
    C, D2 = all_embs.shape
    assert D == D2

    # Tile sizes: sublane multiple of 8 / lane multiple of 128.  Cap tb so the
    # B axis has >= 2 tiles when possible (keeps both v7x TensorCores busy).
    tb = min(tb, _round_up(B, 8))
    tb = min(tb, _round_up(max((B + 1) // 2, 1), 8))
    tb = max(8, _round_up(tb, 8))
    tc = min(tc, _round_up(C, 128))
    tc = max(128, _round_up(tc, 128))

    b_pad = _round_up(B, tb)
    c_pad = _round_up(C, tc)
    padded_classes = (c_pad != C)

    # ---- wrapper-side precompute (O(B*D) / O(C*D), off the hot loop) --------
    embs_f32 = all_embs.astype(jnp.float32)
    vsq = jnp.sum(embs_f32 * embs_f32, axis=1)                     # (C,)
    invv = 1.0 / (1.0 - jnp.clip(vsq, 0.0, 1.0 - EPS))             # (C,)
    mask = jnp.ones((C,), jnp.float32)
    class_rows = jnp.stack([vsq, invv, mask], axis=0)              # (3, C)

    emb2 = all_embs * 2.0                                          # 2*v for MXU
    tgt_embs = all_embs[target_idx]                                # (B, D) gather

    pred = pred_embs
    tgt_e = tgt_embs
    if b_pad != B:
        pred = jnp.pad(pred, ((0, b_pad - B), (0, 0)))
        tgt_e = jnp.pad(tgt_e, ((0, b_pad - B), (0, 0)))
    if padded_classes:
        emb2 = jnp.pad(emb2, ((0, c_pad - C), (0, 0)))
        class_rows = jnp.pad(class_rows, ((0, 0), (0, c_pad - C)))  # mask -> 0

    grid = (b_pad // tb, c_pad // tc)

    kernel = functools.partial(_poincare_xent_kernel,
                               n_lane_chunks=tc // 128,
                               padded_classes=padded_classes)

    per_example = pl.pallas_call(
        kernel,
        out_shape=jax.ShapeDtypeStruct((b_pad, 1), jnp.float32),
        grid_spec=pltpu.PrefetchScalarGridSpec(
            num_scalar_prefetch=0,
            grid=grid,
            in_specs=[
                pl.BlockSpec((tb, D), lambda b, c: (b, 0)),   # pred tile
                pl.BlockSpec((tc, D), lambda b, c: (c, 0)),   # 2*all_embs tile
                pl.BlockSpec((3, tc), lambda b, c: (0, c)),   # class rows
                pl.BlockSpec((tb, D), lambda b, c: (b, 0)),   # gathered targets
            ],
            out_specs=pl.BlockSpec((tb, 1), lambda b, c: (b, 0)),
            scratch_shapes=[
                pltpu.VMEM((tb, 128), jnp.float32),  # lane-kept denom partials
                pltpu.VMEM((tb, 1), jnp.float32),    # exp(+dist) at target
                pltpu.VMEM((tb, 1), jnp.float32),    # ||u||^2
                pltpu.VMEM((tb, 1), jnp.float32),    # 2/(1 - clip(||u||^2))
            ]),
        compiler_params=pltpu.CompilerParams(
            dimension_semantics=("parallel", "arbitrary"),
            vmem_limit_bytes=48 * 1024 * 1024),
    )(pred, emb2, class_rows, tgt_e)

    # Mean reduction over the real (unpadded) batch rows.
    return jnp.mean(per_example[:B, 0])


def _reference_loss(pred_embs, all_embs, target_idx):
    # Pure-JAX reference for a sanity check.
    diff = pred_embs[:, None, :] - all_embs[None, :, :]
    sqdist = jnp.sum(diff * diff, axis=-1)
    u2 = jnp.clip(jnp.sum(pred_embs ** 2, axis=1), 0.0, 1.0 - EPS)[:, None]
    v2 = jnp.clip(jnp.sum(all_embs ** 2, axis=1), 0.0, 1.0 - EPS)[None, :]
    x = 1.0 + 2.0 * sqdist / ((1.0 - u2) * (1.0 - v2))
    dist = jnp.arccosh(x)
    logp = jax.nn.log_softmax(-dist, axis=1)
    return -jnp.mean(logp[jnp.arange(pred_embs.shape[0]), target_idx])


if __name__ == "__main__":
    B, C, D = 12, 200, 32
    key = jax.random.PRNGKey(0)
    k1, k2, k3 = jax.random.split(key, 3)

    # Points strictly inside the Poincare ball (norms < 1).
    pred_embs = 0.1 * jax.random.normal(k1, (B, D), dtype=jnp.float32)
    all_embs = 0.1 * jax.random.normal(k2, (C, D), dtype=jnp.float32)
    target_idx = jax.random.randint(k3, (B,), 0, C, dtype=jnp.int32)

    ref = _reference_loss(pred_embs, all_embs, target_idx)

    # Small tiles: exercises a 2x2 grid with ragged B and padded classes.
    loss_small = poincare_xentropy_loss(pred_embs, all_embs, target_idx,
                                        tb=8, tc=128)
    jax.block_until_ready(loss_small)
    assert jnp.allclose(loss_small, ref, atol=5e-3, rtol=5e-3), (loss_small, ref)

    # Default (production) tile-size path: single C tile, padded classes.
    loss_default = poincare_xentropy_loss(pred_embs, all_embs, target_idx)
    jax.block_until_ready(loss_default)
    assert jnp.allclose(loss_default, ref, atol=5e-3, rtol=5e-3), (loss_default, ref)

    print("KERNEL_OK")
</pallas_src>

<mosaic_0001>
module attributes {stable_mosaic.version = 11 : i64} {
  func.func @_poincare_xent_kernel(%arg0: i32, %arg1: i32, %arg2: memref<8x32xf32, #tpu.memory_space<vmem>>, %arg3: memref<128x32xf32, #tpu.memory_space<vmem>>, %arg4: memref<3x128xf32, #tpu.memory_space<vmem>>, %arg5: memref<8x32xf32, #tpu.memory_space<vmem>>, %arg6: memref<8x1xf32, #tpu.memory_space<vmem>>, %arg7: memref<8x128xf32, #tpu.memory_space<vmem>>, %arg8: memref<8x1xf32, #tpu.memory_space<vmem>>, %arg9: memref<8x1xf32, #tpu.memory_space<vmem>>, %arg10: memref<8x1xf32, #tpu.memory_space<vmem>>) attributes {dimension_semantics = [#tpu.dimension_semantics<parallel>, #tpu.dimension_semantics<arbitrary>], iteration_bounds = array<i64: 2, 2>, scalar_prefetch = 0 : i64, scratch_operands = 4 : i64, tpu.core_type = #tpu.core_type<tc>, window_params = [{transform_indices = @transform_0, window_bounds = array<i64: 8, 32>}, {transform_indices = @transform_1, window_bounds = array<i64: 128, 32>}, {transform_indices = @transform_2, window_bounds = array<i64: 3, 128>}, {transform_indices = @transform_3, window_bounds = array<i64: 8, 32>}, {transform_indices = @transform_4, window_bounds = array<i64: 8, 1>}]} {
    %c0_i32 = arith.constant 0 : i32
    %0 = arith.cmpi eq, %arg1, %c0_i32 : i32
    %1 = arith.extui %0 : i1 to i32
    %c0_i32_0 = arith.constant 0 : i32
    %2 = arith.cmpi ne, %1, %c0_i32_0 : i32
    scf.if %2 {
      %c0_19 = arith.constant 0 : index
      %c0_20 = arith.constant 0 : index
      %37 = vector.load %arg2[%c0_19, %c0_20] : memref<8x32xf32, #tpu.memory_space<vmem>>, vector<8x32xf32>
      %38 = arith.mulf %37, %37 : vector<8x32xf32>
      %cst_21 = arith.constant dense<0.000000e+00> : vector<8xf32>
      %39 = vector.multi_reduction <add>, %38, %cst_21 [1] : vector<8x32xf32> to vector<8xf32>
      %40 = vector.shape_cast %39 : vector<8xf32> to vector<8x1xf32>
      %c0_22 = arith.constant 0 : index
      %c0_23 = arith.constant 0 : index
      %41 = vector.load %arg9[%c0_22, %c0_23] : memref<8x1xf32, #tpu.memory_space<vmem>>, vector<8x1xf32>
      tpu.vector_store %arg9[%c0_22, %c0_23], %40 {strides = array<i32>} : memref<8x1xf32, #tpu.memory_space<vmem>>, vector<8x1xf32>,
      %cst_24 = arith.constant 0.000000e+00 : f32
      %cst_25 = arith.constant 0.999989986 : f32
      %42 = vector.broadcast %cst_24 : f32 to vector<8x1xf32>
      %43 = arith.maximumf %42, %40 : vector<8x1xf32>
      %44 = vector.broadcast %cst_25 : f32 to vector<8x1xf32>
      %45 = arith.minimumf %44, %43 : vector<8x1xf32>
      %cst_26 = arith.constant 1.000000e+00 : f32
      %46 = vector.broadcast %cst_26 : f32 to vector<8x1xf32>
      %47 = arith.subf %46, %45 : vector<8x1xf32>
      %48 = tpu.reciprocal %47 : vector<8x1xf32> -> vector<8x1xf32>
      %cst_27 = arith.constant 2.000000e+00 : f32
      %49 = vector.broadcast %cst_27 : f32 to vector<8x1xf32>
      %50 = arith.mulf %49, %48 : vector<8x1xf32>
      %c0_28 = arith.constant 0 : index
      %c0_29 = arith.constant 0 : index
      %51 = vector.load %arg10[%c0_28, %c0_29] : memref<8x1xf32, #tpu.memory_space<vmem>>, vector<8x1xf32>
      tpu.vector_store %arg10[%c0_28, %c0_29], %50 {strides = array<i32>} : memref<8x1xf32, #tpu.memory_space<vmem>>, vector<8x1xf32>,
      %cst_30 = arith.constant 0.000000e+00 : f32
      %52 = vector.broadcast %cst_30 : f32 to vector<8x128xf32>
      %c0_31 = arith.constant 0 : index
      %c0_32 = arith.constant 0 : index
      %53 = vector.load %arg7[%c0_31, %c0_32] : memref<8x128xf32, #tpu.memory_space<vmem>>, vector<8x128xf32>
      tpu.vector_store %arg7[%c0_31, %c0_32], %52 {strides = array<i32>} : memref<8x128xf32, #tpu.memory_space<vmem>>, vector<8x128xf32>,
      %c0_33 = arith.constant 0 : index
      %c0_34 = arith.constant 0 : index
      %54 = vector.load %arg5[%c0_33, %c0_34] : memref<8x32xf32, #tpu.memory_space<vmem>>, vector<8x32xf32>
      %55 = arith.subf %37, %54 : vector<8x32xf32>
      %56 = arith.mulf %55, %55 : vector<8x32xf32>
      %cst_35 = arith.constant dense<0.000000e+00> : vector<8xf32>
      %57 = vector.multi_reduction <add>, %56, %cst_35 [1] : vector<8x32xf32> to vector<8xf32>
      %58 = vector.shape_cast %57 : vector<8xf32> to vector<8x1xf32>
      %59 = arith.mulf %54, %54 : vector<8x32xf32>
      %cst_36 = arith.constant dense<0.000000e+00> : vector<8xf32>
      %60 = vector.multi_reduction <add>, %59, %cst_36 [1] : vector<8x32xf32> to vector<8xf32>
      %61 = vector.shape_cast %60 : vector<8xf32> to vector<8x1xf32>
      %cst_37 = arith.constant 0.000000e+00 : f32
      %cst_38 = arith.constant 0.999989986 : f32
      %62 = vector.broadcast %cst_37 : f32 to vector<8x1xf32>
      %63 = arith.maximumf %62, %61 : vector<8x1xf32>
      %64 = vector.broadcast %cst_38 : f32 to vector<8x1xf32>
      %65 = arith.minimumf %64, %63 : vector<8x1xf32>
      %cst_39 = arith.constant 1.000000e+00 : f32
      %66 = vector.broadcast %cst_39 : f32 to vector<8x1xf32>
      %67 = arith.subf %66, %65 : vector<8x1xf32>
      %68 = tpu.reciprocal %67 : vector<8x1xf32> -> vector<8x1xf32>
      %69 = arith.mulf %58, %50 : vector<8x1xf32>
      %70 = arith.mulf %69, %68 : vector<8x1xf32>
      %cst_40 = arith.constant 1.000000e+00 : f32
      %71 = vector.broadcast %cst_40 : f32 to vector<8x1xf32>
      %72 = arith.addf %71, %70 : vector<8x1xf32>
      %cst_41 = arith.constant 2.000000e+00 : f32
      %73 = vector.broadcast %cst_41 : f32 to vector<8x1xf32>
      %74 = arith.addf %70, %73 : vector<8x1xf32>
      %75 = arith.mulf %70, %74 : vector<8x1xf32>
      %76 = math.sqrt %75 : vector<8x1xf32>
      %77 = arith.addf %72, %76 : vector<8x1xf32>
      %c0_42 = arith.constant 0 : index
      %c0_43 = arith.constant 0 : index
      %78 = vector.load %arg8[%c0_42, %c0_43] : memref<8x1xf32, #tpu.memory_space<vmem>>, vector<8x1xf32>
      tpu.vector_store %arg8[%c0_42, %c0_43], %77 {strides = array<i32>} : memref<8x1xf32, #tpu.memory_space<vmem>>, vector<8x1xf32>,
    } else {
    }
    %c0 = arith.constant 0 : index
    %c0_1 = arith.constant 0 : index
    %3 = vector.load %arg2[%c0, %c0_1] : memref<8x32xf32, #tpu.memory_space<vmem>>, vector<8x32xf32>
    %c0_2 = arith.constant 0 : index
    %c0_3 = arith.constant 0 : index
    %4 = vector.load %arg3[%c0_2, %c0_3] : memref<128x32xf32, #tpu.memory_space<vmem>>, vector<128x32xf32>
    %cst = arith.constant dense<0.000000e+00> : vector<8x128xf32>
    %5 = tpu.matmul %3, %4, %cst {dimension_numbers = #tpu.dot_dimension_numbers<[1], [1], [0], [0], [0, 0, 1, 0], [], []>} : vector<8x32xf32>, vector<128x32xf32>, vector<8x128xf32> -> vector<8x128xf32>
    %c0_4 = arith.constant 0 : index
    %c0_5 = arith.constant 0 : index
    %6 = vector.load %arg4[%c0_4, %c0_5] : memref<3x128xf32, #tpu.memory_space<vmem>>, vector<1x128xf32>
    %c1 = arith.constant 1 : index
    %c0_6 = arith.constant 0 : index
    %7 = vector.load %arg4[%c1, %c0_6] : memref<3x128xf32, #tpu.memory_space<vmem>>, vector<1x128xf32>
    %c0_7 = arith.constant 0 : index
    %c0_8 = arith.constant 0 : index
    %8 = vector.load %arg9[%c0_7, %c0_8] : memref<8x1xf32, #tpu.memory_space<vmem>>, vector<8x1xf32>
    %9 = vector.broadcast %8 : vector<8x1xf32> to vector<8x128xf32>
    %10 = vector.broadcast %6 : vector<1x128xf32> to vector<8x128xf32>
    %11 = arith.addf %9, %10 : vector<8x128xf32>
    %12 = arith.subf %11, %5 : vector<8x128xf32>
    %cst_9 = arith.constant 0.000000e+00 : f32
    %13 = vector.broadcast %cst_9 : f32 to vector<8x128xf32>
    %14 = arith.maximumf %12, %13 : vector<8x128xf32>
    %c0_10 = arith.constant 0 : index
    %c0_11 = arith.constant 0 : index
    %15 = vector.load %arg10[%c0_10, %c0_11] : memref<8x1xf32, #tpu.memory_space<vmem>>, vector<8x1xf32>
    %16 = vector.broadcast %15 : vector<8x1xf32> to vector<8x128xf32>
    %17 = arith.mulf %14, %16 : vector<8x128xf32>
    %18 = vector.broadcast %7 : vector<1x128xf32> to vector<8x128xf32>
    %19 = arith.mulf %17, %18 : vector<8x128xf32>
    %cst_12 = arith.constant 1.000000e+00 : f32
    %20 = vector.broadcast %cst_12 : f32 to vector<8x128xf32>
    %21 = arith.addf %20, %19 : vector<8x128xf32>
    %cst_13 = arith.constant 2.000000e+00 : f32
    %22 = vector.broadcast %cst_13 : f32 to vector<8x128xf32>
    %23 = arith.addf %19, %22 : vector<8x128xf32>
    %24 = arith.mulf %19, %23 : vector<8x128xf32>
    %25 = math.sqrt %24 : vector<8x128xf32>
    %26 = arith.addf %21, %25 : vector<8x128xf32>
    %27 = tpu.reciprocal %26 {approx = true} : vector<8x128xf32> -> vector<8x128xf32>
    %c1_i32 = arith.constant 1 : i32
    %28 = arith.cmpi ne, %arg1, %c1_i32 : i32
    %29 = arith.extui %28 : i1 to i32
    %c0_i32_14 = arith.constant 0 : i32
    %30 = arith.cmpi ne, %29, %c0_i32_14 : i32
    scf.if %30 {
      %c0_19 = arith.constant 0 : index
      %c0_20 = arith.constant 0 : index
      %37 = vector.load %arg7[%c0_19, %c0_20] : memref<8x128xf32, #tpu.memory_space<vmem>>, vector<8x128xf32>
      %38 = arith.addf %37, %27 : vector<8x128xf32>
      %c0_21 = arith.constant 0 : index
      %c0_22 = arith.constant 0 : index
      %39 = vector.load %arg7[%c0_21, %c0_22] : memref<8x128xf32, #tpu.memory_space<vmem>>, vector<8x128xf32>
      tpu.vector_store %arg7[%c0_21, %c0_22], %38 {strides = array<i32>} : memref<8x128xf32, #tpu.memory_space<vmem>>, vector<8x128xf32>,
    } else {
    }
    %c1_i32_15 = arith.constant 1 : i32
    %31 = arith.cmpi eq, %arg1, %c1_i32_15 : i32
    %32 = arith.extui %31 : i1 to i32
    %c0_i32_16 = arith.constant 0 : i32
    %33 = arith.cmpi ne, %32, %c0_i32_16 : i32
    scf.if %33 {
      %c2 = arith.constant 2 : index
      %c0_19 = arith.constant 0 : index
      %37 = vector.load %arg4[%c2, %c0_19] : memref<3x128xf32, #tpu.memory_space<vmem>>, vector<1x128xf32>
      %c0_20 = arith.constant 0 : index
      %c0_21 = arith.constant 0 : index
      %38 = vector.load %arg7[%c0_20, %c0_21] : memref<8x128xf32, #tpu.memory_space<vmem>>, vector<8x128xf32>
      %39 = vector.broadcast %37 : vector<1x128xf32> to vector<8x128xf32>
      %40 = arith.mulf %27, %39 : vector<8x128xf32>
      %41 = arith.addf %38, %40 : vector<8x128xf32>
      %c0_22 = arith.constant 0 : index
      %c0_23 = arith.constant 0 : index
      %42 = vector.load %arg7[%c0_22, %c0_23] : memref<8x128xf32, #tpu.memory_space<vmem>>, vector<8x128xf32>
      tpu.vector_store %arg7[%c0_22, %c0_23], %41 {strides = array<i32>} : memref<8x128xf32, #tpu.memory_space<vmem>>, vector<8x128xf32>,
    } else {
    }
    %c1_i32_17 = arith.constant 1 : i32
    %34 = arith.cmpi eq, %arg1, %c1_i32_17 : i32
    %35 = arith.extui %34 : i1 to i32
    %c0_i32_18 = arith.constant 0 : i32
    %36 = arith.cmpi ne, %35, %c0_i32_18 : i32
    scf.if %36 {
      %c0_19 = arith.constant 0 : index
      %c0_20 = arith.constant 0 : index
      %37 = vector.load %arg7[%c0_19, %c0_20] : memref<8x128xf32, #tpu.memory_space<vmem>>, vector<8x128xf32>
      %cst_21 = arith.constant dense<0.000000e+00> : vector<8xf32>
      %38 = vector.multi_reduction <add>, %37, %cst_21 [1] : vector<8x128xf32> to vector<8xf32>
      %39 = vector.shape_cast %38 : vector<8xf32> to vector<8x1xf32>
      %c0_22 = arith.constant 0 : index
      %c0_23 = arith.constant 0 : index
      %40 = vector.load %arg8[%c0_22, %c0_23] : memref<8x1xf32, #tpu.memory_space<vmem>>, vector<8x1xf32>
      %41 = arith.mulf %40, %39 : vector<8x1xf32>
      %42 = math.log %41 : vector<8x1xf32>
      %c0_24 = arith.constant 0 : index
      %c0_25 = arith.constant 0 : index
      %43 = vector.load %arg6[%c0_24, %c0_25] : memref<8x1xf32, #tpu.memory_space<vmem>>, vector<8x1xf32>
      tpu.vector_store %arg6[%c0_24, %c0_25], %42 {strides = array<i32>} : memref<8x1xf32, #tpu.memory_space<vmem>>, vector<8x1xf32>,
    } else {
    }
    return
  }
  func.func @transform_0(%arg0: i32, %arg1: i32) -> (i32, i32) {
    %c0_i32 = arith.constant 0 : i32
    %c0_i32_0 = arith.constant 0 : i32
    return %arg0, %c0_i32 : i32, i32
  }
  func.func @transform_1(%arg0: i32, %arg1: i32) -> (i32, i32) {
    %c0_i32 = arith.constant 0 : i32
    %c0_i32_0 = arith.constant 0 : i32
    return %arg1, %c0_i32 : i32, i32
  }
  func.func @transform_2(%arg0: i32, %arg1: i32) -> (i32, i32) {
    %c0_i32 = arith.constant 0 : i32
    %c0_i32_0 = arith.constant 0 : i32
    return %c0_i32, %arg1 : i32, i32
  }
  func.func @transform_3(%arg0: i32, %arg1: i32) -> (i32, i32) {
    %c0_i32 = arith.constant 0 : i32
    %c0_i32_0 = arith.constant 0 : i32
    return %arg0, %c0_i32 : i32, i32
  }
  func.func @transform_4(%arg0: i32, %arg1: i32) -> (i32, i32) {
    %c0_i32 = arith.constant 0 : i32
    %c0_i32_0 = arith.constant 0 : i32
    return %arg0, %c0_i32 : i32, i32
  }
}

</mosaic_0001>

<bundles_post_ra>
// kernel: tpu_custom_call.1
= control target key start
LH: loop header
LB: loop body
LE: loop exit
PB: predicated region body
PF: predicated region fallthrough
CT: control target
= control target key end

     0   :  { %s829_s15 = smov 0   ;;  %s831_s16 = smov 0   ;;  %s954_s0 = inlined_call_operand.vmem [shape: f32[16,32], index: 0, kind: input, shape index: {}]   ;;  %s955_s1 = inlined_call_operand.vmem [shape: f32[256,32], index: 1, kind: input, shape index: {}]   ;;  %s956_s2 = inlined_call_operand.vmem [shape: f32[3,256], index: 2, kind: input, shape index: {}]   ;;  %s957_s3 = inlined_call_operand.vmem [shape: f32[16,32], index: 3, kind: input, shape index: {}]   ;;  %s958_s4 = inlined_call_operand.vmem [shape: f32[16,1], index: 4, kind: output, shape index: {}]  }
   0x1   :  { %s833_s17 = smov 0   ;;  %s835_s18 = smov 0  }
   0x2   :  { %s837_s19 = smov 0  }
   0x3 LB: > { %s23_s20 = sadd.s32 1, %s790_s17  ;;  %s26_s21 = sadd.s32 1, %s794_s18  ;;  %s798_s19 = sphi %s837_s19, %s14_s19   ;;  %s794_s18 = sphi %s835_s18, %s962_s18   ;;  %s790_s17 = sphi %s833_s17, %s961_s17   ;;  %s786_s16 = sphi %s831_s16, %s960_s16   ;;  %s782_s15 = sphi %s829_s15, %s959_s15  }
   0x4   : > { %p24_p0 = scmp.ge.s32.totalorder %s23_s20, 2  ;;  %p619_p1 = scmp.ge.s32.totalorder %s798_s19, 1 }
   0x5   : > { %p202_p2 = scmp.lt.s32.totalorder %s798_s19, 5 }
   0x6   : > { %s964_s20 = smov (%p24_p0, %s23_s20), 0  ;;  %s966_s21 = smov (!%p24_p0, %s26_s21), %s794_s18 }
   0x7   : > { %p203_p3 = pnand %p619_p1, %p202_p2  ;;  %p28_p4 = scmp.ge.s32.totalorder %s966_s21, 2 }
   0x8   : > { %p239_p5 = scmp.lt.s32.totalorder (!%p203_p3), %s786_s16, 1  ;;  %s621_s22 = sshll.u32 (!%p203_p3), %s782_s15, 4 }
   0x9   : > { %s968_s21 = smov (%p28_p4, %s966_s21), 0  ;;  %206 = sbr.rel (%p203_p3) target bundleno = 694 (0x2b6), region = 36 }
   0xa   : > { %p244_p6 = scmp.lt.s32.totalorder (!%p203_p3), %s621_s22, 31  ;;  %p249_p7 = scmp.lt.s32.totalorder (!%p203_p3), %s782_s15, 1 }
   0xb   : > { %p626_p8 = scmp.ne.s32.totalorder (!%p203_p3), %s782_s15, 0 }
   0xe   : > { %s970_s16 = smov (!%p239_p5, %s786_s16), 1  ;;  %s972_s22 = smov (!%p244_p6, %s621_s22), 31 }
   0xf   : > { %s863_s23 = sshll.u32 %s970_s16, 3  ;;  %s622_s27 = sshll.u32 %s972_s22, 3 }
  0x10   : > { %s869_s26 = scalar_lea.vmem %s954_s0, %s863_s23  ;;  %s874_s30 = scalar_lea.vmem %s955_s1, %s622_s27 }
  0x11   : > { %s256_s7 = scalar_lea.vmem %s957_s3, %s863_s23  ;;  %s260_s11 = scalar_lea.vmem %s958_s4, %s863_s23 }
  0x12   : > { %s250_s8 = scalar_select %p249_p7, %s782_s15, 1 }
  0x13   : > { %264 = sbr.rel (%p626_p8) target bundleno = 217 (0xd9), region = 40 }
  0x14   : > { %s623_s12 = sshll.u32 %s250_s8, 2 }
  0x15   : > { %s888_s16 = scalar_lea.vmem %s956_s2, %s623_s12 }
  0x18   : > { %v265_v0 = vld [vmem:[%s869_s26] sm:$0xff]  ;;  %vm267_vm0 = vcmask 261120   ;;  %v800_v9 = vmov 0.0   ;;  %vm271_vm1 = vcmask 7168  }
  0x19   : > { %v280_v1 = vld [vmem:[%s256_s7] sm:$0xff]  ;;  %v266_v2 = vmul.f32 %v265_v0, %v265_v0  ;;  %279 = vst [vmem:[#allocation2] sm:$0xff] %v800_v9 }
  0x1a   : > { %v286_v3 = vmul.f32 %v280_v1, %v280_v1  ;;  %v281_v4 = vsub.f32 %v265_v0, %v280_v1 }
  0x1b   : > { %v268_v5 = vsel %vm267_vm0, %v266_v2, 0.0 }
  0x1c   : > { %v282_v6 = vmul.f32 %v281_v4, %v281_v4  ;;  %269 = vadd.xlane.f32.xlu0 %v268_v5  ;;  %v287_v7 = vsel %vm267_vm0, %v286_v3, 0.0 }
  0x1e   : > { %v283_v8 = vsel %vm267_vm0, %v282_v6, 0.0 }
  0x1f   : > { %284 = vadd.xlane.f32.xlu1 %v283_v8 }
  0x20   : > { %288 = vadd.xlane.f32.xlu0 %v287_v7 }
  0xa5   : > { %v270_v10 = vpop.xlane.xlu0 %269 }
  0xa6   : > { %272 = vst.msk [vmem:[#allocation4] sm:$0xff] %vm271_vm1, %v270_v10  ;;  %v273_v11 = vmax.f32 %v270_v10, 0.0 }
  0xa8   : > { %v274_v12 = vmin.f32 %v273_v11, 0.99999  ;;  %v285_v19 = vpop.xlane.xlu1 %284 }
  0xa9   : > { %v289_v13 = vpop.xlane.xlu0 %288 }
  0xaa   : > { %v275_v14 = vsub.f32 1.0, %v274_v12  ;;  %v290_v15 = vmax.f32 %v289_v13, 0.0 }
  0xac   : > { %747 = vrcp.f32 %v275_v14  ;;  %v291_v16 = vmin.f32 %v290_v15, 0.99999 }
  0xae   : > { %v292_v17 = vsub.f32 1.0, %v291_v16 }
  0xb0   : > { %749 = vrcp.f32 %v292_v17 }
  0xb9   : > { %v748_v18 = vpop.eup %747 }
  0xba   : > { %v277_v20 = vmul.f32 2.0, %v748_v18 }
  0xbc   : > { %278 = vst.msk [vmem:[#allocation5] sm:$0xff] %vm271_vm1, %v277_v20  ;;  %v294_v21 = vmul.f32 %v285_v19, %v277_v20 }
  0xbd   : > { %v750_v22 = vpop.eup %749 }
  0xbe   : > { %v295_v23 = vmul.f32 %v750_v22, %v294_v21 }
  0xc0   : > { %v297_v24 = vadd.f32 2.0, %v295_v23  ;;  %v296_v29 = vadd.f32 1.0, %v295_v23 }
  0xc2   : > { %v298_v25 = vmul.f32 %v297_v24, %v295_v23 }
  0xc4   : > { %751 = vrsqrt.f32 %v298_v25  ;;  %vm301_vm2 = vcmp.eq.f32.partialorder %v298_v25, inf  ;;  %v304_v28 = vand.u32 2147483648, %v298_v25  ;;  %vm303_vm3 = vcmp.eq.f32.partialorder %v298_v25, 0.0 }
  0xd1   : > { %v752_v26 = vpop.eup %751 }
  0xd2   : > { %v300_v27 = vmul.f32 %v752_v26, %v298_v25 }
  0xd4   : > { %v302_v30 = vsel %vm301_vm2, %v298_v25, %v300_v27 }
  0xd5   : > { %v305_v31 = vsel %vm303_vm3, %v304_v28, %v302_v30 }
  0xd6   : > { %v306_v32 = vadd.f32 %v305_v31, %v296_v29 }
  0xd8   : > { %307 = vst.msk [vmem:[#allocation3] sm:$0xff] %vm271_vm1, %v306_v32 }
  0xd9 PF: > { %v324_v33 = vld [vmem:[%s874_s30 + $0x78] sm:$0xff]  ;;  %vm325_vm4 = vcmask 261120   ;;  %v801_v34 = vmov 0.0   ;;  %vm802_vm5 = vmmov 0   ;;  %v803_v35 = vmov 0   ;;  %v323_v36 = vld [vmem:[%s874_s30 + $0x70] sm:$0xff] }
  0xda   : > { %668 = vmatprep.subr.mxu0 %v801_v34  ;;  %700 = vmatprep.mubr.msk.f32.mxu0 %vm802_vm5, %v801_v34  ;;  %v449_v37 = vld [vmem:[#allocation4] sm:$0xff]  ;;  %v322_v38 = vld [vmem:[%s874_s30 + $0x68] sm:$0xff]  ;;  %v462_v39 = vld [vmem:[#allocation5] sm:$0xff]  ;;  %p646_p9 = scmp.eq.s32.totalorder %s782_s15, 1 }
  0xdb   : > { %669 = vmatpush3.xpose.msk.msra.mxu0 %vm325_vm4, %v324_v33  ;;  %753 = vset.pattern.permute.xlu0 %v803_v35  ;;  %v321_v40 = vld [vmem:[%s874_s30 + $0x60] sm:$0xff]  ;;  %v320_v41 = vld [vmem:[%s874_s30 + $0x58] sm:$0xff]  ;;  %v319_v42 = vld [vmem:[%s874_s30 + $0x50] sm:$0xff] }
  0xdc   : > { %670 = vmatprep.subr.mxu0 %v801_v34  ;;  %452 = vperm.xlu0 %753, %v449_v37   ;;  %v318_v43 = vld [vmem:[%s874_s30 + $0x48] sm:$0xff]  ;;  %v317_v44 = vld [vmem:[%s874_s30 + $0x40] sm:$0xff]  ;;  %v316_v45 = vld [vmem:[%s874_s30 + $0x38] sm:$0xff] }
  0xdd   : > { %v315_v46 = vld [vmem:[%s874_s30 + $0x30] sm:$0xff]  ;;  %v314_v47 = vld [vmem:[%s874_s30 + $0x28] sm:$0xff]  ;;  %v313_v48 = vld [vmem:[%s874_s30 + $0x20] sm:$0xff] }
  0xde   : > { %v312_v49 = vld [vmem:[%s874_s30 + $0x18] sm:$0xff]  ;;  %v311_v50 = vld [vmem:[%s874_s30 + $0x10] sm:$0xff]  ;;  %v310_v51 = vld [vmem:[%s874_s30 + $0x8] sm:$0xff] }
  0xdf   : > { %671 = vmatpush3.xpose.msk.msra.mxu0 %vm325_vm4, %v323_v36  ;;  %v309_v52 = vld [vmem:[%s874_s30] sm:$0xff] }
  0xe0   : > { %672 = vmatprep.subr.mxu0 %v801_v34  ;;  %465 = vperm.xlu0 %753, %v462_v39   ;;  %v308_v53 = vld [vmem:[%s869_s26] sm:$0xff] }
  0xe1   : > { %v644_v54 = vld [vmem:[%s888_s16] ss:$0 sm:$0xff]  ;;  %v645_v62 = vld [vmem:[%s888_s16 + $0x1] ss:$0 sm:$0xff] }
  0xe3   : > { %673 = vmatpush3.xpose.msk.msra.mxu0 %vm325_vm4, %v322_v38 }
  0xe4   : > { %674 = vmatprep.subr.mxu0 %v801_v34 }
  0xe7   : > { %675 = vmatpush3.xpose.msk.msra.mxu0 %vm325_vm4, %v321_v40 }
  0xe8   : > { %676 = vmatprep.subr.mxu0 %v801_v34 }
  0xeb   : > { %677 = vmatpush3.xpose.msk.msra.mxu0 %vm325_vm4, %v320_v41 }
  0xec   : > { %678 = vmatprep.subr.mxu0 %v801_v34 }
  0xef   : > { %679 = vmatpush3.xpose.msk.msra.mxu0 %vm325_vm4, %v319_v42 }
  0xf0   : > { %680 = vmatprep.subr.mxu0 %v801_v34 }
  0xf3   : > { %681 = vmatpush3.xpose.msk.msra.mxu0 %vm325_vm4, %v318_v43 }
  0xf4   : > { %682 = vmatprep.subr.mxu0 %v801_v34 }
  0xf7   : > { %683 = vmatpush3.xpose.msk.msra.mxu0 %vm325_vm4, %v317_v44 }
  0xf8   : > { %684 = vmatprep.subr.mxu0 %v801_v34 }
  0xfb   : > { %685 = vmatpush3.xpose.msk.msra.mxu0 %vm325_vm4, %v316_v45 }
  0xfc   : > { %686 = vmatprep.subr.mxu0 %v801_v34 }
  0xff   : > { %687 = vmatpush3.xpose.msk.msra.mxu0 %vm325_vm4, %v315_v46 }
 0x100   : > { %688 = vmatprep.subr.mxu0 %v801_v34 }
 0x103   : > { %689 = vmatpush3.xpose.msk.msra.mxu0 %vm325_vm4, %v314_v47 }
 0x104   : > { %690 = vmatprep.subr.mxu0 %v801_v34 }
 0x107   : > { %691 = vmatpush3.xpose.msk.msra.mxu0 %vm325_vm4, %v313_v48 }
 0x108   : > { %692 = vmatprep.subr.mxu0 %v801_v34 }
 0x10b   : > { %693 = vmatpush3.xpose.msk.msra.mxu0 %vm325_vm4, %v312_v49 }
 0x10c   : > { %694 = vmatprep.subr.mxu0 %v801_v34 }
 0x10f   : > { %695 = vmatpush3.xpose.msk.msra.mxu0 %vm325_vm4, %v311_v50 }
 0x110   : > { %696 = vmatprep.subr.mxu0 %v801_v34 }
 0x113   : > { %697 = vmatpush3.xpose.msk.msra.mxu0 %vm325_vm4, %v310_v51 }
 0x114   : > { %698 = vmatprep.subr.mxu0 %v801_v34 }
 0x117   : > { %699 = vmatpush3.xpose.msk.msra.mxu0 %vm325_vm4, %v309_v52 }
 0x11a   : > { %701 = vmatmul.mubr.msk.f32.vlgmr.msra.gmra.mxu0 %vm325_vm4, %v308_v53 }
 0x157   : > { %v453_v55 = vpop.permute.xlu0 %452 }
 0x158   : > { %v459_v56 = vadd.f32 %v644_v54, %v453_v55 }
 0x15b   : > { %v466_v61 = vpop.permute.xlu0 %465 }
 0x1da   : > { %v443_v57 = vpop.f32.mrf.mxu0 }
 0x1db   : > { %v460_v58 = vsub.f32 %v459_v56, %v443_v57 }
 0x1dc   : > { %v702_v59 = vpop.f32.mrf.mxu0 }
 0x1dd   : > { %v461_v60 = vmax.f32 %v460_v58, 0.0 }
 0x1df   : > { %v468_v63 = vmul.f32 %v466_v61, %v461_v60 }
 0x1e1   : > { %v473_v0 = vmul.f32 %v645_v62, %v468_v63 }
 0x1e3   : > { %v475_v1 = vadd.f32 2.0, %v473_v0  ;;  %v474_v6 = vadd.f32 1.0, %v473_v0 }
 0x1e5   : > { %v476_v2 = vmul.f32 %v475_v1, %v473_v0 }
 0x1e7   : > { %754 = vrsqrt.f32 %v476_v2  ;;  %vm479_vm6 = vcmp.eq.f32.partialorder %v476_v2, inf  ;;  %v482_v5 = vand.u32 2147483648, %v476_v2  ;;  %vm481_vm7 = vcmp.eq.f32.partialorder %v476_v2, 0.0 }
 0x1f4   : > { %v755_v3 = vpop.eup %754 }
 0x1f5   : > { %v478_v4 = vmul.f32 %v755_v3, %v476_v2 }
 0x1f7   : > { %v480_v7 = vsel %vm479_vm6, %v476_v2, %v478_v4 }
 0x1f8   : > { %v483_v8 = vsel %vm481_vm7, %v482_v5, %v480_v7 }
 0x1f9   : > { %v484_v9 = vadd.f32 %v483_v8, %v474_v6 }
 0x1fb   : > { %756 = vrcp.f32 %v484_v9 }
 0x204   : > { %489 = sbr.rel (%p646_p9) target bundleno = 525 (0x20d), region = 44 }
 0x208   : > { %v757_v10 = vpop.eup %756 }
 0x209   : > { %v490_v11 = vld [vmem:[#allocation2] sm:$0xff] }
 0x20a   : > { %v491_v12 = vadd.f32 %v757_v10, %v490_v11 }
 0x20c   : > { %492 = vst [vmem:[#allocation2] sm:$0xff] %v491_v12 }
 0x20d PF: > { %p647_p10 = scmp.ne.s32.totalorder %s782_s15, 1 }
 0x20f   : > { %496 = sbr.rel (%p647_p10) target bundleno = 694 (0x2b6), region = 48 }
 0x214   : > { %v648_v13 = vld [vmem:[%s888_s16 + $0x2] ss:$0 sm:$0xff]  ;;  %v509_v17 = vld [vmem:[#allocation3] sm:$0xff]  ;;  %vm513_vm8 = vcmask 7168  }
 0x215   : > { %v498_v14 = vld [vmem:[#allocation2] sm:$0xff]  ;;  %v503_v15 = vmul.f32 %v757_v10, %v648_v13 }
 0x217   : > { %v504_v16 = vadd.f32 %v503_v15, %v498_v14 }
 0x219   : > { %505 = vst [vmem:[#allocation2] sm:$0xff] %v504_v16  ;;  %507 = vadd.xlane.f32.xlu0 %v504_v16 }
 0x2a2   : > { %v508_v18 = vpop.xlane.xlu0 %507 }
 0x2a3   : > { %v510_v19 = vmul.f32 %v509_v17, %v508_v18 }
 0x2a5   : > { %758 = vlog2.f32 %v510_v19 }
 0x2b2   : > { %v759_v20 = vpop.eup %758 }
 0x2b3   : > { %v512_v21 = vmul.f32 0.6931472, %v759_v20 }
 0x2b5   : > { %514 = vst.msk [vmem:[%s260_s11] sm:$0xff] %vm513_vm8, %v512_v21 }
 0x2b6 PF: > { %s14_s19 = sadd.s32 1, %s798_s19   ;;  %s959_s15 = smov %s790_s17 }
 0x2b7   : > { %p11_p11 = scmp.ge.s32.totalorder %s14_s19, 6   ;;  %s960_s16 = smov %s794_s18 }
 0x2b8   : > { %s961_s17 = smov %s964_s20  ;;  %s962_s18 = smov %s968_s21 }
 0x2b9   :  { %13 = sbr.rel (!%p11_p11) target bundleno = 3 (0x3), region = 87 }

</bundles_post_ra>
